<compile_context>
chip_gen: v6e
topology: v6e:2x2x1
jax: 0.10.0
libtpu: 0.0.40
codegen_flags: <defaults>
</compile_context>

<pallas_src>
import functools

import jax
import jax.numpy as jnp
from jax.experimental import pallas as pl
from jax.experimental.pallas import tpu as pltpu


_VMEM_LIMIT = 32 * 1024 * 1024  # safe scoped limit on v5e / v6e / v7x


# ----------------------------------------------------------------------------
# small helpers
# ----------------------------------------------------------------------------
def _round_up(x, m):
    return ((x + m - 1) // m) * m


def _pad2d(a, rows, cols):
    return jnp.pad(a, ((0, rows - a.shape[0]), (0, cols - a.shape[1])))


def _choose_tiling(n):
    """n_pad = round_up(n, 128); tile_m, tile_k divide n_pad.

    tile_m <= 256 with >= 2 dst tiles whenever possible (v7x megacore);
    tile_k as large as possible (<= 4096) on the reduction axis.
    """
    n_pad = _round_up(n, 128)
    if n_pad >= 512 and n_pad % 256 == 0:
        tile_m = 256
    elif n_pad >= 256:
        tile_m = 128
    else:  # n_pad == 128: split so the parallel dst axis has 2 steps
        tile_m = 64
    units = n_pad // 128
    d = min(units, 32)  # cap tile_k at 32 * 128 = 4096
    while units % d:
        d -= 1
    tile_k = d * 128
    return n_pad, tile_m, tile_k


# ----------------------------------------------------------------------------
# Fused GCN layer kernel:
#   grid = (dst tiles [parallel], src tiles [arbitrary, reduction last])
#   acc  += A01[i,k] @ (dis[k] * X[k])          (int8 -> bf16, f32 accumulate)
#   out_i = (dis[i] * acc) @ W + b   (+ ReLU)   (epilogue at k == last)
# ----------------------------------------------------------------------------
def _gcn_layer_kernel(a_ref, x_ref, s_src_ref, s_dst_ref, w_ref, b_ref,
                      o_ref, acc_ref, *, apply_relu):
    k = pl.program_id(1)

    @pl.when(k == 0)
    def _():
        acc_ref[...] = jnp.zeros_like(acc_ref)

    a = a_ref[...].astype(jnp.bfloat16)                       # 0/1 exact in bf16
    x = x_ref[...] * s_src_ref[...].astype(jnp.bfloat16)      # source-side scale
    acc_ref[...] += jnp.dot(a, x, preferred_element_type=jnp.float32)

    @pl.when(k == pl.num_programs(1) - 1)
    def _():
        s = acc_ref[...] * s_dst_ref[...]                      # dst-side scale, f32
        h = jnp.dot(s, w_ref[...], preferred_element_type=jnp.float32) + b_ref[...]
        if apply_relu:
            h = jnp.maximum(h, 0.0)
        o_ref[...] = h.astype(o_ref.dtype)


def gcn_layer(a01_pad, x_pad, dis_pad, w_pad, b_pad, *,
              apply_relu, out_dtype, tile_m, tile_k):
    """a01_pad: (N_pad, N_pad) int8 0/1 adjacency (dst, src)
       x_pad:   (N_pad, F_in_pad) bf16 node features
       dis_pad: (N_pad, 1) f32 deg^-1/2
       w_pad:   (F_in_pad, F_out_pad) f32, b_pad: (1, F_out_pad) f32
       -> (N_pad, F_out_pad) out_dtype
    """
    n_pad = a01_pad.shape[0]
    f_in = x_pad.shape[1]
    f_out = w_pad.shape[1]
    kern = functools.partial(_gcn_layer_kernel, apply_relu=apply_relu)
    return pl.pallas_call(
        kern,
        out_shape=jax.ShapeDtypeStruct((n_pad, f_out), out_dtype),
        grid=(n_pad // tile_m, n_pad // tile_k),
        in_specs=[
            pl.BlockSpec((tile_m, tile_k), lambda i, k: (i, k)),  # A01 tile (int8)
            pl.BlockSpec((tile_k, f_in), lambda i, k: (k, 0)),    # X src rows (bf16)
            pl.BlockSpec((tile_k, 1), lambda i, k: (k, 0)),       # deg^-1/2 (src)
            pl.BlockSpec((tile_m, 1), lambda i, k: (i, 0)),       # deg^-1/2 (dst)
            pl.BlockSpec((f_in, f_out), lambda i, k: (0, 0)),     # W (resident)
            pl.BlockSpec((1, f_out), lambda i, k: (0, 0)),        # bias
        ],
        out_specs=pl.BlockSpec((tile_m, f_out), lambda i, k: (i, 0)),
        scratch_shapes=[pltpu.VMEM((tile_m, f_in), jnp.float32)],
        compiler_params=pltpu.CompilerParams(
            dimension_semantics=("parallel", "arbitrary"),
            vmem_limit_bytes=_VMEM_LIMIT,
        ),
    )(a01_pad, x_pad, dis_pad, dis_pad, w_pad, b_pad)


# ----------------------------------------------------------------------------
# GCNEncoder forward (plain-JAX glue + two fused-layer pallas_calls)
# ----------------------------------------------------------------------------
def gcn_encoder_forward(x, edge_index, params):
    n, f_in = x.shape
    hidden = params["w1"].shape[1]
    f_out = params["w2"].shape[1]

    n_pad, tile_m, tile_k = _choose_tiling(n)
    f_in_pad = _round_up(f_in, 128)
    hid_pad = _round_up(hidden, 128)
    f_out_pad = _round_up(f_out, 128)

    row = edge_index[0]  # source nodes
    col = edge_index[1]  # target nodes
    num_edges = row.shape[0]

    # 0/1 adjacency (dst, src), stored int8; built once at padded size.
    a01_pad = (
        jnp.zeros((n_pad, n_pad), jnp.int32)
        .at[col, row].add(1)
        .astype(jnp.int8)
    )
    # Symmetric normalization folded into per-node scales deg^-1/2.
    deg = jnp.zeros((n,), jnp.float32).at[col].add(jnp.ones((num_edges,), jnp.float32))
    dis = jnp.where(deg > 0, jax.lax.rsqrt(jnp.maximum(deg, 1.0)), 0.0)
    dis_pad = jnp.pad(dis, (0, n_pad - n)).reshape(n_pad, 1)

    # Lane-dense (128-wide) zero padding of features and parameters.
    x_pad = _pad2d(x.astype(jnp.float32), n_pad, f_in_pad).astype(jnp.bfloat16)
    w1_pad = _pad2d(params["w1"].astype(jnp.float32), f_in_pad, hid_pad)
    b1_pad = _pad2d(params["b1"].reshape(1, -1).astype(jnp.float32), 1, hid_pad)
    w2_pad = _pad2d(params["w2"].astype(jnp.float32), hid_pad, f_out_pad)
    b2_pad = _pad2d(params["b2"].reshape(1, -1).astype(jnp.float32), 1, f_out_pad)

    # F.dropout(p=0.9) in eval mode -> identity.
    h_pad = gcn_layer(a01_pad, x_pad, dis_pad, w1_pad, b1_pad,
                      apply_relu=True, out_dtype=jnp.bfloat16,
                      tile_m=tile_m, tile_k=tile_k)
    out_pad = gcn_layer(a01_pad, h_pad, dis_pad, w2_pad, b2_pad,
                        apply_relu=False, out_dtype=jnp.float32,
                        tile_m=tile_m, tile_k=tile_k)
    return out_pad[:n, :f_out]


# ----------------------------------------------------------------------------
# pure-JAX f32 reference for a correctness check
# ----------------------------------------------------------------------------
def _reference_forward(x, edge_index, params):
    n = x.shape[0]
    row, col = edge_index[0], edge_index[1]
    deg = jnp.zeros((n,), jnp.float32).at[col].add(1.0)
    dis = jnp.where(deg > 0, jax.lax.rsqrt(jnp.maximum(deg, 1.0)), 0.0)
    norm = dis[row] * dis[col]
    a_hat = jnp.zeros((n, n), jnp.float32).at[col, row].add(norm)
    h = a_hat @ (x @ params["w1"]) + params["b1"]
    h = jnp.maximum(h, 0.0)
    return a_hat @ (h @ params["w2"]) + params["b2"]


def _glorot(key, fan_in, fan_out, dtype=jnp.float32):
    limit = jnp.sqrt(6.0 / (fan_in + fan_out)).astype(dtype)
    return jax.random.uniform(key, (fan_in, fan_out), dtype, -limit, limit)


if __name__ == "__main__":
    key = jax.random.PRNGKey(0)
    k_x, k_w1, k_w2 = jax.random.split(key, 3)

    # small shapes consistent with the module
    num_nodes = 16
    in_channels = 8
    out_channels = 4
    hidden = 2 * out_channels  # conv1 output width

    x = jax.random.normal(k_x, (num_nodes, in_channels), dtype=jnp.float32)

    # bidirectional ring graph (no self loops), edge_index shape (2, E)
    src = jnp.arange(num_nodes, dtype=jnp.int32)
    dst = (src + 1) % num_nodes
    edge_index = jnp.concatenate(
        [jnp.stack([src, dst], axis=0), jnp.stack([dst, src], axis=0)], axis=1
    )

    # deterministic parameters (Glorot weights, zero biases, as in GCNConv)
    params = {
        "w1": _glorot(k_w1, in_channels, hidden),
        "b1": jnp.zeros((hidden,), jnp.float32),
        "w2": _glorot(k_w2, hidden, out_channels),
        "b2": jnp.zeros((out_channels,), jnp.float32),
    }

    fwd = jax.jit(gcn_encoder_forward)
    out = jax.block_until_ready(fwd(x, edge_index, params))

    assert out.shape == (num_nodes, out_channels)
    assert bool(jnp.all(jnp.isfinite(out)))

    ref = _reference_forward(x, edge_index, params)
    # exact int8 adjacency; only X / H / scales pass through bf16
    assert jnp.allclose(out, ref, atol=3e-2, rtol=3e-2)

    print("KERNEL_OK")
</pallas_src>

<mosaic_0001>
module attributes {stable_mosaic.version = 11 : i64} {
  func.func private @main(%arg0: i32) attributes {dimension_semantics = [#tpu.dimension_semantics<core_parallel>], iteration_bounds = array<i64: 2>, tpu.core_type = #tpu.core_type<sc_scalar_subcore>, window_params = []} {
    return
  }
}

module attributes {stable_mosaic.version = 11 : i64} {
  func.func private @main(%arg0: i32) attributes {dimension_semantics = [#tpu.dimension_semantics<core_parallel>], iteration_bounds = array<i64: 2>, tpu.core_type = #tpu.core_type<sc_scalar_subcore>, window_params = []} {
    return
  }
}

module attributes {stable_mosaic.version = 11 : i64} {
  func.func @_gcn_layer_kernel(%arg0: i32, %arg1: i32, %arg2: memref<64x128xi8, #tpu.memory_space<vmem>>, %arg3: memref<128x128xbf16, #tpu.memory_space<vmem>>, %arg4: memref<128x1xf32, #tpu.memory_space<vmem>>, %arg5: memref<64x1xf32, #tpu.memory_space<vmem>>, %arg6: memref<128x128xf32, #tpu.memory_space<vmem>>, %arg7: memref<1x128xf32, #tpu.memory_space<vmem>>, %arg8: memref<64x128xbf16, #tpu.memory_space<vmem>>, %arg9: memref<64x128xf32, #tpu.memory_space<vmem>>) attributes {dimension_semantics = [#tpu.dimension_semantics<parallel>, #tpu.dimension_semantics<arbitrary>], iteration_bounds = array<i64: 2, 1>, scalar_prefetch = 0 : i64, scratch_operands = 1 : i64, tpu.core_type = #tpu.core_type<tc>, window_params = [{transform_indices = @transform_0, window_bounds = array<i64: 64, 128>}, {transform_indices = @transform_1, window_bounds = array<i64: 128, 128>}, {transform_indices = @transform_2, window_bounds = array<i64: 128, 1>}, {transform_indices = @transform_3, window_bounds = array<i64: 64, 1>}, {pipeline_mode = #tpu.pipeline_mode<synchronous>, transform_indices = @transform_4, window_bounds = array<i64: 128, 128>}, {pipeline_mode = #tpu.pipeline_mode<synchronous>, transform_indices = @transform_5, window_bounds = array<i64: 1, 128>}, {transform_indices = @transform_6, window_bounds = array<i64: 64, 128>}]} {
    %c0_i32 = arith.constant 0 : i32
    %0 = arith.cmpi eq, %arg1, %c0_i32 : i32
    %1 = arith.extui %0 : i1 to i32
    %c0_i32_0 = arith.constant 0 : i32
    %2 = arith.cmpi ne, %1, %c0_i32_0 : i32
    scf.if %2 {
      %cst_12 = arith.constant 0.000000e+00 : f32
      %17 = vector.broadcast %cst_12 : f32 to vector<64x128xf32>
      %c0_13 = arith.constant 0 : index
      %c0_14 = arith.constant 0 : index
      %18 = vector.load %arg9[%c0_13, %c0_14] : memref<64x128xf32, #tpu.memory_space<vmem>>, vector<64x128xf32>
      tpu.vector_store %arg9[%c0_13, %c0_14], %17 {strides = array<i32>} : memref<64x128xf32, #tpu.memory_space<vmem>>, vector<64x128xf32>,
    } else {
    }
    %c0 = arith.constant 0 : index
    %c0_1 = arith.constant 0 : index
    %3 = vector.load %arg2[%c0, %c0_1] : memref<64x128xi8, #tpu.memory_space<vmem>>, vector<64x128xi8>
    %4 = arith.sitofp %3 : vector<64x128xi8> to vector<64x128xbf16>
    %c0_2 = arith.constant 0 : index
    %c0_3 = arith.constant 0 : index
    %5 = vector.load %arg3[%c0_2, %c0_3] : memref<128x128xbf16, #tpu.memory_space<vmem>>, vector<128x128xbf16>
    %c0_4 = arith.constant 0 : index
    %c0_5 = arith.constant 0 : index
    %6 = vector.load %arg4[%c0_4, %c0_5] : memref<128x1xf32, #tpu.memory_space<vmem>>, vector<128x1xf32>
    %7 = arith.truncf %6 : vector<128x1xf32> to vector<128x1xbf16>
    %8 = vector.broadcast %7 : vector<128x1xbf16> to vector<128x128xbf16>
    %9 = arith.mulf %5, %8 : vector<128x128xbf16>
    %c0_6 = arith.constant 0 : index
    %c0_7 = arith.constant 0 : index
    %10 = vector.load %arg9[%c0_6, %c0_7] : memref<64x128xf32, #tpu.memory_space<vmem>>, vector<64x128xf32>
    %cst = arith.constant dense<0.000000e+00> : vector<64x128xf32>
    %11 = tpu.matmul %4, %9, %cst {dimension_numbers = #tpu.dot_dimension_numbers<[1], [0], [0], [1], [0, 0, 1, 1], [], []>} : vector<64x128xbf16>, vector<128x128xbf16>, vector<64x128xf32> -> vector<64x128xf32>
    %12 = arith.addf %10, %11 : vector<64x128xf32>
    %c0_8 = arith.constant 0 : index
    %c0_9 = arith.constant 0 : index
    %13 = vector.load %arg9[%c0_8, %c0_9] : memref<64x128xf32, #tpu.memory_space<vmem>>, vector<64x128xf32>
    tpu.vector_store %arg9[%c0_8, %c0_9], %12 {strides = array<i32>} : memref<64x128xf32, #tpu.memory_space<vmem>>, vector<64x128xf32>,
    %c0_i32_10 = arith.constant 0 : i32
    %14 = arith.cmpi eq, %arg1, %c0_i32_10 : i32
    %15 = arith.extui %14 : i1 to i32
    %c0_i32_11 = arith.constant 0 : i32
    %16 = arith.cmpi ne, %15, %c0_i32_11 : i32
    scf.if %16 {
      %c0_12 = arith.constant 0 : index
      %c0_13 = arith.constant 0 : index
      %17 = vector.load %arg9[%c0_12, %c0_13] : memref<64x128xf32, #tpu.memory_space<vmem>>, vector<64x128xf32>
      %c0_14 = arith.constant 0 : index
      %c0_15 = arith.constant 0 : index
      %18 = vector.load %arg5[%c0_14, %c0_15] : memref<64x1xf32, #tpu.memory_space<vmem>>, vector<64x1xf32>
      %19 = vector.broadcast %18 : vector<64x1xf32> to vector<64x128xf32>
      %20 = arith.mulf %17, %19 : vector<64x128xf32>
      %c0_16 = arith.constant 0 : index
      %c0_17 = arith.constant 0 : index
      %21 = vector.load %arg6[%c0_16, %c0_17] : memref<128x128xf32, #tpu.memory_space<vmem>>, vector<128x128xf32>
      %cst_18 = arith.constant dense<0.000000e+00> : vector<64x128xf32>
      %22 = tpu.matmul %20, %21, %cst_18 {dimension_numbers = #tpu.dot_dimension_numbers<[1], [0], [0], [1], [0, 0, 1, 1], [], []>} : vector<64x128xf32>, vector<128x128xf32>, vector<64x128xf32> -> vector<64x128xf32>
      %c0_19 = arith.constant 0 : index
      %c0_20 = arith.constant 0 : index
      %23 = vector.load %arg7[%c0_19, %c0_20] : memref<1x128xf32, #tpu.memory_space<vmem>>, vector<1x128xf32>
      %24 = vector.broadcast %23 : vector<1x128xf32> to vector<64x128xf32>
      %25 = arith.addf %22, %24 : vector<64x128xf32>
      %cst_21 = arith.constant 0.000000e+00 : f32
      %26 = vector.broadcast %cst_21 : f32 to vector<64x128xf32>
      %27 = arith.maximumf %25, %26 : vector<64x128xf32>
      %28 = arith.truncf %27 : vector<64x128xf32> to vector<64x128xbf16>
      %c0_22 = arith.constant 0 : index
      %c0_23 = arith.constant 0 : index
      %29 = vector.load %arg8[%c0_22, %c0_23] : memref<64x128xbf16, #tpu.memory_space<vmem>>, vector<64x128xbf16>
      tpu.vector_store %arg8[%c0_22, %c0_23], %28 {strides = array<i32>} : memref<64x128xbf16, #tpu.memory_space<vmem>>, vector<64x128xbf16>,
    } else {
    }
    return
  }
  func.func @transform_0(%arg0: i32, %arg1: i32) -> (i32, i32) {
    %c0_i32 = arith.constant 0 : i32
    return %arg0, %arg1 : i32, i32
  }
  func.func @transform_1(%arg0: i32, %arg1: i32) -> (i32, i32) {
    %c0_i32 = arith.constant 0 : i32
    %c0_i32_0 = arith.constant 0 : i32
    return %arg1, %c0_i32 : i32, i32
  }
  func.func @transform_2(%arg0: i32, %arg1: i32) -> (i32, i32) {
    %c0_i32 = arith.constant 0 : i32
    %c0_i32_0 = arith.constant 0 : i32
    return %arg1, %c0_i32 : i32, i32
  }
  func.func @transform_3(%arg0: i32, %arg1: i32) -> (i32, i32) {
    %c0_i32 = arith.constant 0 : i32
    %c0_i32_0 = arith.constant 0 : i32
    return %arg0, %c0_i32 : i32, i32
  }
  func.func @transform_4(%arg0: i32, %arg1: i32) -> (i32, i32) {
    %c0_i32 = arith.constant 0 : i32
    %c0_i32_0 = arith.constant 0 : i32
    %c0_i32_1 = arith.constant 0 : i32
    return %c0_i32, %c0_i32_0 : i32, i32
  }
  func.func @transform_5(%arg0: i32, %arg1: i32) -> (i32, i32) {
    %c0_i32 = arith.constant 0 : i32
    %c0_i32_0 = arith.constant 0 : i32
    %c0_i32_1 = arith.constant 0 : i32
    return %c0_i32, %c0_i32_0 : i32, i32
  }
  func.func @transform_6(%arg0: i32, %arg1: i32) -> (i32, i32) {
    %c0_i32 = arith.constant 0 : i32
    %c0_i32_0 = arith.constant 0 : i32
    return %arg0, %c0_i32 : i32, i32
  }
}

module attributes {stable_mosaic.version = 11 : i64} {
  func.func @_gcn_layer_kernel(%arg0: i32, %arg1: i32, %arg2: memref<64x128xi8, #tpu.memory_space<vmem>>, %arg3: memref<128x128xbf16, #tpu.memory_space<vmem>>, %arg4: memref<128x1xf32, #tpu.memory_space<vmem>>, %arg5: memref<64x1xf32, #tpu.memory_space<vmem>>, %arg6: memref<128x128xf32, #tpu.memory_space<vmem>>, %arg7: memref<1x128xf32, #tpu.memory_space<vmem>>, %arg8: memref<64x128xf32, #tpu.memory_space<vmem>>, %arg9: memref<64x128xf32, #tpu.memory_space<vmem>>) attributes {dimension_semantics = [#tpu.dimension_semantics<parallel>, #tpu.dimension_semantics<arbitrary>], iteration_bounds = array<i64: 2, 1>, scalar_prefetch = 0 : i64, scratch_operands = 1 : i64, tpu.core_type = #tpu.core_type<tc>, window_params = [{transform_indices = @transform_0, window_bounds = array<i64: 64, 128>}, {transform_indices = @transform_1, window_bounds = array<i64: 128, 128>}, {transform_indices = @transform_2, window_bounds = array<i64: 128, 1>}, {transform_indices = @transform_3, window_bounds = array<i64: 64, 1>}, {pipeline_mode = #tpu.pipeline_mode<synchronous>, transform_indices = @transform_4, window_bounds = array<i64: 128, 128>}, {pipeline_mode = #tpu.pipeline_mode<synchronous>, transform_indices = @transform_5, window_bounds = array<i64: 1, 128>}, {transform_indices = @transform_6, window_bounds = array<i64: 64, 128>}]} {
    %c0_i32 = arith.constant 0 : i32
    %0 = arith.cmpi eq, %arg1, %c0_i32 : i32
    %1 = arith.extui %0 : i1 to i32
    %c0_i32_0 = arith.constant 0 : i32
    %2 = arith.cmpi ne, %1, %c0_i32_0 : i32
    scf.if %2 {
      %cst_12 = arith.constant 0.000000e+00 : f32
      %17 = vector.broadcast %cst_12 : f32 to vector<64x128xf32>
      %c0_13 = arith.constant 0 : index
      %c0_14 = arith.constant 0 : index
      %18 = vector.load %arg9[%c0_13, %c0_14] : memref<64x128xf32, #tpu.memory_space<vmem>>, vector<64x128xf32>
      tpu.vector_store %arg9[%c0_13, %c0_14], %17 {strides = array<i32>} : memref<64x128xf32, #tpu.memory_space<vmem>>, vector<64x128xf32>,
    } else {
    }
    %c0 = arith.constant 0 : index
    %c0_1 = arith.constant 0 : index
    %3 = vector.load %arg2[%c0, %c0_1] : memref<64x128xi8, #tpu.memory_space<vmem>>, vector<64x128xi8>
    %4 = arith.sitofp %3 : vector<64x128xi8> to vector<64x128xbf16>
    %c0_2 = arith.constant 0 : index
    %c0_3 = arith.constant 0 : index
    %5 = vector.load %arg3[%c0_2, %c0_3] : memref<128x128xbf16, #tpu.memory_space<vmem>>, vector<128x128xbf16>
    %c0_4 = arith.constant 0 : index
    %c0_5 = arith.constant 0 : index
    %6 = vector.load %arg4[%c0_4, %c0_5] : memref<128x1xf32, #tpu.memory_space<vmem>>, vector<128x1xf32>
    %7 = arith.truncf %6 : vector<128x1xf32> to vector<128x1xbf16>
    %8 = vector.broadcast %7 : vector<128x1xbf16> to vector<128x128xbf16>
    %9 = arith.mulf %5, %8 : vector<128x128xbf16>
    %c0_6 = arith.constant 0 : index
    %c0_7 = arith.constant 0 : index
    %10 = vector.load %arg9[%c0_6, %c0_7] : memref<64x128xf32, #tpu.memory_space<vmem>>, vector<64x128xf32>
    %cst = arith.constant dense<0.000000e+00> : vector<64x128xf32>
    %11 = tpu.matmul %4, %9, %cst {dimension_numbers = #tpu.dot_dimension_numbers<[1], [0], [0], [1], [0, 0, 1, 1], [], []>} : vector<64x128xbf16>, vector<128x128xbf16>, vector<64x128xf32> -> vector<64x128xf32>
    %12 = arith.addf %10, %11 : vector<64x128xf32>
    %c0_8 = arith.constant 0 : index
    %c0_9 = arith.constant 0 : index
    %13 = vector.load %arg9[%c0_8, %c0_9] : memref<64x128xf32, #tpu.memory_space<vmem>>, vector<64x128xf32>
    tpu.vector_store %arg9[%c0_8, %c0_9], %12 {strides = array<i32>} : memref<64x128xf32, #tpu.memory_space<vmem>>, vector<64x128xf32>,
    %c0_i32_10 = arith.constant 0 : i32
    %14 = arith.cmpi eq, %arg1, %c0_i32_10 : i32
    %15 = arith.extui %14 : i1 to i32
    %c0_i32_11 = arith.constant 0 : i32
    %16 = arith.cmpi ne, %15, %c0_i32_11 : i32
    scf.if %16 {
      %c0_12 = arith.constant 0 : index
      %c0_13 = arith.constant 0 : index
      %17 = vector.load %arg9[%c0_12, %c0_13] : memref<64x128xf32, #tpu.memory_space<vmem>>, vector<64x128xf32>
      %c0_14 = arith.constant 0 : index
      %c0_15 = arith.constant 0 : index
      %18 = vector.load %arg5[%c0_14, %c0_15] : memref<64x1xf32, #tpu.memory_space<vmem>>, vector<64x1xf32>
      %19 = vector.broadcast %18 : vector<64x1xf32> to vector<64x128xf32>
      %20 = arith.mulf %17, %19 : vector<64x128xf32>
      %c0_16 = arith.constant 0 : index
      %c0_17 = arith.constant 0 : index
      %21 = vector.load %arg6[%c0_16, %c0_17] : memref<128x128xf32, #tpu.memory_space<vmem>>, vector<128x128xf32>
      %cst_18 = arith.constant dense<0.000000e+00> : vector<64x128xf32>
      %22 = tpu.matmul %20, %21, %cst_18 {dimension_numbers = #tpu.dot_dimension_numbers<[1], [0], [0], [1], [0, 0, 1, 1], [], []>} : vector<64x128xf32>, vector<128x128xf32>, vector<64x128xf32> -> vector<64x128xf32>
      %c0_19 = arith.constant 0 : index
      %c0_20 = arith.constant 0 : index
      %23 = vector.load %arg7[%c0_19, %c0_20] : memref<1x128xf32, #tpu.memory_space<vmem>>, vector<1x128xf32>
      %24 = vector.broadcast %23 : vector<1x128xf32> to vector<64x128xf32>
      %25 = arith.addf %22, %24 : vector<64x128xf32>
      %c0_21 = arith.constant 0 : index
      %c0_22 = arith.constant 0 : index
      %26 = vector.load %arg8[%c0_21, %c0_22] : memref<64x128xf32, #tpu.memory_space<vmem>>, vector<64x128xf32>
      tpu.vector_store %arg8[%c0_21, %c0_22], %25 {strides = array<i32>} : memref<64x128xf32, #tpu.memory_space<vmem>>, vector<64x128xf32>,
    } else {
    }
    return
  }
  func.func @transform_0(%arg0: i32, %arg1: i32) -> (i32, i32) {
    %c0_i32 = arith.constant 0 : i32
    return %arg0, %arg1 : i32, i32
  }
  func.func @transform_1(%arg0: i32, %arg1: i32) -> (i32, i32) {
    %c0_i32 = arith.constant 0 : i32
    %c0_i32_0 = arith.constant 0 : i32
    return %arg1, %c0_i32 : i32, i32
  }
  func.func @transform_2(%arg0: i32, %arg1: i32) -> (i32, i32) {
    %c0_i32 = arith.constant 0 : i32
    %c0_i32_0 = arith.constant 0 : i32
    return %arg1, %c0_i32 : i32, i32
  }
  func.func @transform_3(%arg0: i32, %arg1: i32) -> (i32, i32) {
    %c0_i32 = arith.constant 0 : i32
    %c0_i32_0 = arith.constant 0 : i32
    return %arg0, %c0_i32 : i32, i32
  }
  func.func @transform_4(%arg0: i32, %arg1: i32) -> (i32, i32) {
    %c0_i32 = arith.constant 0 : i32
    %c0_i32_0 = arith.constant 0 : i32
    %c0_i32_1 = arith.constant 0 : i32
    return %c0_i32, %c0_i32_0 : i32, i32
  }
  func.func @transform_5(%arg0: i32, %arg1: i32) -> (i32, i32) {
    %c0_i32 = arith.constant 0 : i32
    %c0_i32_0 = arith.constant 0 : i32
    %c0_i32_1 = arith.constant 0 : i32
    return %c0_i32, %c0_i32_0 : i32, i32
  }
  func.func @transform_6(%arg0: i32, %arg1: i32) -> (i32, i32) {
    %c0_i32 = arith.constant 0 : i32
    %c0_i32_0 = arith.constant 0 : i32
    return %arg0, %c0_i32 : i32, i32
  }
}

</mosaic_0001>

<bundles_post_ra>
// kernel: gcn_encoder_forward.2
= control target key start
LH: loop header
LB: loop body
LE: loop exit
PB: predicated region body
PF: predicated region fallthrough
CT: control target
= control target key end

     0   :  { %s1335_s21 = smov 0   ;;  %s1337_s22 = smov 0   ;;  %s1554_s0 = inlined_call_operand.vmem [shape: s8[128,128], index: 0, kind: input, shape index: {}]   ;;  %s1555_s1 = inlined_call_operand.vmem [shape: bf16[128,128], index: 1, kind: input, shape index: {}]   ;;  %s1556_s2 = inlined_call_operand.vmem [shape: f32[128,1], index: 2, kind: input, shape index: {}, may-alias: {2,3}]   ;;  %s1557_s3 = inlined_call_operand.vmem [shape: f32[128,1], index: 3, kind: input, shape index: {}, may-alias: {2,3}]   ;;  %s1558_s4 = inlined_call_operand.vmem [shape: f32[128,128], index: 4, kind: input, shape index: {}]   ;;  %s1559_s5 = inlined_call_operand.vmem [shape: f32[1,128], index: 5, kind: input, shape index: {}]   ;;  %s1560_s6 = inlined_call_operand.vmem [shape: bf16[128,128], index: 6, kind: output, shape index: {}]  }
   0x1   :  { %s1339_s23 = smov 0  }
   0x2 LB: > { %s28_s24 = sadd.s32 1, %s1291_s22  ;;  %p1083_p0 = scmp.ge.s32.totalorder %s1295_s23, 1  ;;  %s1295_s23 = sphi %s1339_s23, %s16_s23   ;;  %s1291_s22 = sphi %s1337_s22, %s1562_s22   ;;  %s1287_s21 = sphi %s1335_s21, %s1561_s21  }
   0x3   : > { %p30_p1 = scmp.ge.s32.totalorder %s28_s24, 2  ;;  %p263_p2 = scmp.lt.s32.totalorder %s1295_s23, 3 }
   0x5   : > { %s1564_s24 = smov (%p30_p1, %s28_s24), 0  ;;  %p264_p3 = pnand %p1083_p0, %p263_p2 }
   0x6   : > { %s1086_s7 = sshll.u32 (!%p264_p3), %s1287_s21, 3  ;;  %s1084_s19 = sshll.u32 (!%p264_p3), %s1287_s21, 1 }
   0x7   : > { %267 = sbr.rel (%p264_p3) target bundleno = 592 (0x250), region = 44  ;;  %p333_p4 = scmp.lt.s32.totalorder (!%p264_p3), %s1086_s7, 15 }
   0x8   : > { %p312_p5 = scmp.lt.s32.totalorder (!%p264_p3), %s1084_s19, 3 }
   0xc   : > { %v393_v0 = vld [vmem:[%s1556_s2 + $0x70] sm:$0xff]  ;;  %v394_v1 = vld [vmem:[%s1556_s2 + $0x78] sm:$0xff]  ;;  %v1297_v3 = vmov 0   ;;  %v391_v6 = vld [vmem:[%s1556_s2 + $0x60] sm:$0xff]  ;;  %s1566_s7 = smov (!%p333_p4, %s1086_s7), 15  ;;  %s1568_s19 = smov (!%p312_p5, %s1084_s19), 3  ;;  %v446_v49 = vlaneseq }
   0xd   : > { %v389_v2 = vld [vmem:[%s1556_s2 + $0x50] sm:$0xff]  ;;  %1272 = vset.pattern.permute.xlu1 %v1297_v3  ;;  %1271 = vset.pattern.permute.xlu0 %v1297_v3  ;;  %v402_v4 = vpack.c.bf16 %v394_v1, %v393_v0  ;;  %v390_v5 = vld [vmem:[%s1556_s2 + $0x58] sm:$0xff]  ;;  %v392_v7 = vld [vmem:[%s1556_s2 + $0x68] sm:$0xff]  ;;  %s1087_s15 = sshll.u32 %s1566_s7, 3  ;;  %s1085_s20 = sshll.u32 %s1568_s19, 3 }
   0xe   : > { %v400_v8 = vpack.c.bf16 %v390_v5, %v389_v2  ;;  %v387_v9 = vld [vmem:[%s1556_s2 + $0x40] sm:$0xff]  ;;  %v388_v10 = vld [vmem:[%s1556_s2 + $0x48] sm:$0xff]  ;;  %v401_v11 = vpack.c.bf16 %v392_v7, %v391_v6  ;;  %v385_v13 = vld [vmem:[%s1556_s2 + $0x30] sm:$0xff]  ;;  %s336_s18 = scalar_lea.vmem %s1557_s3, %s1087_s15  ;;  %s1414_s27 = scalar_lea.vmem %s1554_s0, %s1085_s20  ;;  %v1298_v47 = vmov 839922192   ;;  %v447_v53 = vshrl.u32 %v446_v49, 7 }
   0xf   : > { %433 = vperm.xlu0 %1271, %v402_v4   ;;  %v399_v12 = vpack.c.bf16 %v388_v10, %v387_v9  ;;  %v386_v14 = vld [vmem:[%s1556_s2 + $0x38] sm:$0xff]  ;;  %v383_v15 = vld [vmem:[%s1556_s2 + $0x20] sm:$0xff]  ;;  %v384_v16 = vld [vmem:[%s1556_s2 + $0x28] sm:$0xff]  ;;  %v444_v48 = vunpack.c.l.s4 %v1298_v47  ;;  %v1299_v50 = vmov 1985246804   ;;  %s1089_s12 = sshll.u32 %s1566_s7, 2 }
  0x10   : > { %425 = vperm.xlu1 %1272, %v400_v8   ;;  %v398_v17 = vpack.c.bf16 %v386_v14, %v385_v13  ;;  %v397_v18 = vpack.c.bf16 %v384_v16, %v383_v15  ;;  %v381_v19 = vld [vmem:[%s1556_s2 + $0x10] sm:$0xff]  ;;  %v382_v20 = vld [vmem:[%s1556_s2 + $0x18] sm:$0xff]  ;;  %v379_v21 = vld [vmem:[%s1556_s2] sm:$0xff]  ;;  %v451_v51 = vunpack.c.l.s4 %v1299_v50  ;;  %s342_s15 = scalar_lea.vmem %s1560_s6, %s1089_s12 }
  0x11   : > { %v380_v22 = vld [vmem:[%s1556_s2 + $0x8] sm:$0xff]  ;;  %v396_v23 = vpack.c.bf16 %v382_v20, %v381_v19  ;;  %v735_v25 = vld [vmem:[%s336_s18] sm:$0xff]  ;;  %v737_v27 = vld [vmem:[%s336_s18 + $0x10] sm:$0xff]  ;;  %v445_v52 = vunpack.c.0.s8 %v444_v48 }
  0x12   : > { %v395_v24 = vpack.c.bf16 %v380_v22, %v379_v21  ;;  %v736_v26 = vld [vmem:[%s336_s18 + $0x8] sm:$0xff]  ;;  %v738_v28 = vld [vmem:[%s336_s18 + $0x18] sm:$0xff]  ;;  %v739_v29 = vld [vmem:[%s336_s18 + $0x20] sm:$0xff]  ;;  %v452_v54 = vunpack.c.0.s8 %v451_v51 }
  0x13   : > { %429 = vperm.xlu0 %1271, %v401_v11   ;;  %v740_v30 = vld [vmem:[%s336_s18 + $0x28] sm:$0xff]  ;;  %v741_v31 = vld [vmem:[%s336_s18 + $0x30] sm:$0xff]  ;;  %v742_v32 = vld [vmem:[%s336_s18 + $0x38] sm:$0xff]  ;;  %v1456_v55 = vsub.s32 %v445_v52, %v447_v53 }
  0x14   : > { %421 = vperm.xlu1 %1272, %v399_v12   ;;  %v1417_v33 = vld [vmem:[%s1414_s27] sm:$0xff]  ;;  %v806_v35 = vld [vmem:[%s1558_s4 + $0x78] sm:$0xff]  ;;  %v805_v36 = vld [vmem:[%s1558_s4 + $0x70] sm:$0xff]  ;;  %v1458_v56 = vsub.s32 %v452_v54, %v447_v53 }
  0x15   : > { %v359_v34 = vunpack.c.l.s8.bf16 %v1417_v33  ;;  %1200 = vmatprep.subr.mxu1 %v806_v35  ;;  %v804_v37 = vld [vmem:[%s1558_s4 + $0x68] sm:$0xff]  ;;  %v803_v38 = vld [vmem:[%s1558_s4 + $0x60] sm:$0xff]  ;;  %v802_v39 = vld [vmem:[%s1558_s4 + $0x58] sm:$0xff] }
  0x16   : > { %1201 = vmatpush3.msra.mxu1 %v806_v35  ;;  %v801_v40 = vld [vmem:[%s1558_s4 + $0x50] sm:$0xff]  ;;  %v800_v41 = vld [vmem:[%s1558_s4 + $0x48] sm:$0xff]  ;;  %v799_v42 = vld [vmem:[%s1558_s4 + $0x40] sm:$0xff] }
  0x17   : > { %417 = vperm.xlu0 %1271, %v398_v17   ;;  %1192 = vmatprep.mubr.bf16.mxu0 %v359_v34  ;;  %v798_v43 = vld [vmem:[%s1558_s4 + $0x38] sm:$0xff]  ;;  %v797_v44 = vld [vmem:[%s1558_s4 + $0x30] sm:$0xff]  ;;  %v796_v45 = vld [vmem:[%s1558_s4 + $0x28] sm:$0xff] }
  0x18   : > { %413 = vperm.xlu1 %1272, %v397_v18   ;;  %1202 = vmatprep.subr.mxu1 %v805_v36  ;;  %v795_v46 = vld [vmem:[%s1558_s4 + $0x20] sm:$0xff]  ;;  %v377_v58 = vld [vmem:[%s1555_s1 + $0x38] sm:$0xf]  ;;  %v378_v59 = vld [vmem:[%s1555_s1 + $0x3c] sm:$0xf] }
  0x19   : > { %1203 = vmatpush3.msra.mxu1 %v805_v36  ;;  %v373_v63 = vld [vmem:[%s1555_s1 + $0x28] sm:$0xf]  ;;  %v374_v0 = vld [vmem:[%s1555_s1 + $0x2c] sm:$0xf]  ;;  %v375_v7 = vld [vmem:[%s1555_s1 + $0x30] sm:$0xf] }
  0x1a   : > { %1204 = vmatprep.subr.mxu1 %v804_v37  ;;  %v376_v8 = vld [vmem:[%s1555_s1 + $0x34] sm:$0xf]  ;;  %v371_v18 = vld [vmem:[%s1555_s1 + $0x20] sm:$0xf]  ;;  %v372_v19 = vld [vmem:[%s1555_s1 + $0x24] sm:$0xf] }
  0x1b   : > { %409 = vperm.xlu0 %1271, %v396_v23   ;;  %1205 = vmatpush3.msra.mxu1 %v804_v37  ;;  %v367_v34 = vld [vmem:[%s1555_s1 + $0x10] sm:$0xf]  ;;  %v368_v37 = vld [vmem:[%s1555_s1 + $0x14] sm:$0xf]  ;;  %v363_v52 = vld [vmem:[%s1555_s1] sm:$0xf] }
  0x1c   : > { %405 = vperm.xlu1 %1272, %v395_v24   ;;  %1206 = vmatprep.subr.mxu1 %v803_v38  ;;  %v364_v53 = vld [vmem:[%s1555_s1 + $0x4] sm:$0xf] }
  0x1d   : > { %1207 = vmatpush3.msra.mxu1 %v803_v38 }
  0x1e   : > { %1208 = vmatprep.subr.mxu1 %v802_v39 }
  0x1f   : > { %745 = vperm.xlu0 %1271, %v735_v25   ;;  %1209 = vmatpush3.msra.mxu1 %v802_v39 }
  0x20   : > { %750 = vperm.xlu1 %1272, %v736_v26   ;;  %1210 = vmatprep.subr.mxu1 %v801_v40 }
  0x21   : > { %1211 = vmatpush3.msra.mxu1 %v801_v40 }
  0x22   : > { %1212 = vmatprep.subr.mxu1 %v800_v41 }
  0x23   : > { %755 = vperm.xlu0 %1271, %v737_v27   ;;  %1213 = vmatpush3.msra.mxu1 %v800_v41 }
  0x24   : > { %760 = vperm.xlu1 %1272, %v738_v28   ;;  %1214 = vmatprep.subr.mxu1 %v799_v42  ;;  %v369_v28 = vld [vmem:[%s1555_s1 + $0x18] sm:$0xf] }
  0x25   : > { %1215 = vmatpush3.msra.mxu1 %v799_v42 }
  0x26   : > { %1216 = vmatprep.subr.mxu1 %v798_v43 }
  0x27   : > { %765 = vperm.xlu0 %1271, %v739_v29   ;;  %1217 = vmatpush3.msra.mxu1 %v798_v43  ;;  %v370_v29 = vld [vmem:[%s1555_s1 + $0x1c] sm:$0xf] }
  0x28   : > { %770 = vperm.xlu1 %1272, %v740_v30   ;;  %1218 = vmatprep.subr.mxu1 %v797_v44 }
  0x29   : > { %1219 = vmatpush3.msra.mxu1 %v797_v44 }
  0x2a   : > { %1220 = vmatprep.subr.mxu1 %v796_v45 }
  0x2b   : > { %775 = vperm.xlu0 %1271, %v741_v31   ;;  %1221 = vmatpush3.msra.mxu1 %v796_v45  ;;  %v365_v45 = vld [vmem:[%s1555_s1 + $0x8] sm:$0xf] }
  0x2c   : > { %780 = vperm.xlu1 %1272, %v742_v32   ;;  %1222 = vmatprep.subr.mxu1 %v795_v46 }
  0x2d   : > { %1223 = vmatpush3.msra.mxu1 %v795_v46  ;;  %v366_v46 = vld [vmem:[%s1555_s1 + $0xc] sm:$0xf] }
  0x8a   : > { %v434_v57 = vpop.permute.xlu0 %433 }
  0x8b   : > { %v547_v60 = vrot.slane %v434_v57, %v1456_v55  ;;  %v554_v61 = vrot.slane %v434_v57, %v1458_v56  ;;  %v426_v62 = vpop.permute.xlu1 %425 }
  0x8c   : > { %v519_v1 = vrot.slane %v426_v62, %v1456_v55  ;;  %v526_v2 = vrot.slane %v426_v62, %v1458_v56  ;;  %v794_v62 = vld [vmem:[%s1558_s4 + $0x18] sm:$0xff] }
  0x8d   : > { %v585_v3 = vmul.bf16 %v547_v60, %v377_v58  ;;  %v586_v4 = vmul.bf16 %v554_v61, %v378_v59  ;;  %v360_v59 = vunpack.c.h.s8.bf16 %v1417_v33  ;;  %1224 = vmatprep.subr.mxu1 %v794_v62  ;;  %v792_v33 = vld [vmem:[%s1558_s4 + $0x8] sm:$0xff] }
  0x8e   : > { %v581_v5 = vmul.bf16 %v519_v1, %v373_v63  ;;  %v430_v6 = vpop.permute.xlu0 %429  ;;  %v582_v9 = vmul.bf16 %v526_v2, %v374_v0  ;;  %v793_v63 = vld [vmem:[%s1558_s4 + $0x10] sm:$0xff]  ;;  %1225 = vmatpush3.msra.mxu1 %v794_v62  ;;  %v791_v0 = vld [vmem:[%s1558_s4] sm:$0xff] }
  0x8f   : > { %v533_v10 = vrot.slane %v430_v6, %v1456_v55  ;;  %v540_v11 = vrot.slane %v430_v6, %v1458_v56  ;;  %v422_v12 = vpop.permute.xlu1 %421  ;;  %v1097_v13 = vcombine.low %v585_v3, %v586_v4  ;;  %1226 = vmatprep.subr.mxu1 %v793_v63 }
  0x90   : > { %v505_v16 = vrot.slane %v422_v12, %v1456_v55  ;;  %v512_v17 = vrot.slane %v422_v12, %v1458_v56  ;;  %v1095_v22 = vcombine.low %v581_v5, %v582_v9  ;;  %1227 = vmatpush3.msra.mxu1 %v793_v63 }
  0x91   : > { %v583_v14 = vmul.bf16 %v533_v10, %v375_v7  ;;  %v584_v15 = vmul.bf16 %v540_v11, %v376_v8  ;;  %1176 = vmatprep.subr.bf16.mxu0 %v1097_v13  ;;  %1228 = vmatprep.subr.mxu1 %v792_v33 }
  0x92   : > { %v418_v20 = vpop.permute.xlu0 %417  ;;  %1177 = vmatpush3.bf16.msra.mxu0 %v1097_v13  ;;  %v579_v23 = vmul.bf16 %v505_v16, %v371_v18  ;;  %v580_v24 = vmul.bf16 %v512_v17, %v372_v19  ;;  %1229 = vmatpush3.msra.mxu1 %v792_v33 }
  0x93   : > { %v1096_v21 = vcombine.low %v583_v14, %v584_v15  ;;  %v491_v25 = vrot.slane %v418_v20, %v1456_v55  ;;  %v498_v26 = vrot.slane %v418_v20, %v1458_v56  ;;  %v414_v27 = vpop.permute.xlu1 %413  ;;  %1230 = vmatprep.subr.mxu1 %v791_v0 }
  0x94   : > { %v477_v30 = vrot.slane %v414_v27, %v1456_v55  ;;  %v484_v35 = vrot.slane %v414_v27, %v1458_v56  ;;  %v1094_v36 = vcombine.low %v579_v23, %v580_v24  ;;  %1231 = vmatpush3.msra.mxu1 %v791_v0 }
  0x95   : > { %1178 = vmatprep.subr.bf16.mxu0 %v1096_v21  ;;  %v577_v31 = vmul.bf16 %v491_v25, %v369_v28  ;;  %v578_v32 = vmul.bf16 %v498_v26, %v370_v29  ;;  %v1098_v25 = vld [vmem:[%s1559_s5] ss:$0 sm:$0xff] }
  0x96   : > { %1179 = vmatpush3.bf16.msra.mxu0 %v1096_v21  ;;  %v410_v38 = vpop.permute.xlu0 %409  ;;  %v575_v39 = vmul.bf16 %v477_v30, %v367_v34  ;;  %v576_v40 = vmul.bf16 %v484_v35, %v368_v37 }
  0x97   : > { %1180 = vmatprep.subr.bf16.mxu0 %v1095_v22  ;;  %v463_v41 = vrot.slane %v410_v38, %v1456_v55  ;;  %v470_v42 = vrot.slane %v410_v38, %v1458_v56  ;;  %v406_v43 = vpop.permute.xlu1 %405  ;;  %v1093_v44 = vcombine.low %v577_v31, %v578_v32 }
  0x98   : > { %v449_v47 = vrot.slane %v406_v43, %v1456_v55  ;;  %v456_v50 = vrot.slane %v406_v43, %v1458_v56  ;;  %v1092_v51 = vcombine.low %v575_v39, %v576_v40  ;;  %v358_v56 = vld [vmem:[%s1414_s27 + $0x8] sm:$0xff] }
  0x99   : > { %v573_v48 = vmul.bf16 %v463_v41, %v365_v45  ;;  %v574_v49 = vmul.bf16 %v470_v42, %v366_v46  ;;  %v361_v60 = vunpack.c.l.s8.bf16 %v358_v56  ;;  %v362_v61 = vunpack.c.h.s8.bf16 %v358_v56 }
  0x9a   : > { %1181 = vmatpush3.bf16.msra.mxu0 %v1095_v22  ;;  %v571_v54 = vmul.bf16 %v449_v47, %v363_v52  ;;  %v572_v57 = vmul.bf16 %v456_v50, %v364_v53  ;;  %v746_v1 = vpop.permute.xlu0 %745 }
  0x9b   : > { %1182 = vmatprep.subr.bf16.mxu0 %v1094_v36  ;;  %v1091_v58 = vcombine.low %v573_v48, %v574_v49  ;;  %v751_v2 = vpop.permute.xlu1 %750 }
  0x9c   : > { %v1090_v55 = vcombine.low %v571_v54, %v572_v57 }
  0x9e   : > { %1183 = vmatpush3.bf16.msra.mxu0 %v1094_v36  ;;  %v756_v5 = vpop.permute.xlu0 %755 }
  0x9f   : > { %1184 = vmatprep.subr.bf16.mxu0 %v1093_v44  ;;  %v761_v8 = vpop.permute.xlu1 %760 }
  0xa2   : > { %1185 = vmatpush3.bf16.msra.mxu0 %v1093_v44  ;;  %v766_v13 = vpop.permute.xlu0 %765 }
  0xa3   : > { %1186 = vmatprep.subr.bf16.mxu0 %v1092_v51  ;;  %v771_v17 = vpop.permute.xlu1 %770 }
  0xa6   : > { %1187 = vmatpush3.bf16.msra.mxu0 %v1092_v51  ;;  %v776_v20 = vpop.permute.xlu0 %775 }
  0xa7   : > { %1188 = vmatprep.subr.bf16.mxu0 %v1091_v58  ;;  %v781_v23 = vpop.permute.xlu1 %780 }
  0xaa   : > { %1189 = vmatpush3.bf16.msra.mxu0 %v1091_v58 }
  0xab   : > { %1190 = vmatprep.subr.bf16.mxu0 %v1090_v55 }
  0xae   : > { %1191 = vmatpush3.bf16.msra.mxu0 %v1090_v55 }
  0xb1   : > { %1193 = vmatmul.mubr.bf16.vlgmr.msra.gmra.mxu0 %v360_v59 }
  0xb2   : > { %1196 = vmatprep.mubr.bf16.mxu0 %v361_v60 }
  0xb9   : > { %1197 = vmatmul.mubr.bf16.gmra.mxu0 %v362_v61 }
 0x171   : > { %v1194_v3 = vpop.f32.mrf.mxu0 }
 0x172   : > { %v785_v11 = vmul.f32 %v1194_v3, %v756_v5 }
 0x173   : > { %v677_v4 = vpop.f32.mrf.mxu0 }
 0x174   : > { %v783_v6 = vmul.f32 %v746_v1, %v677_v4 }
 0x175   : > { %v1195_v7 = vpop.f32.mrf.mxu0 }
 0x176   : > { %1232 = vmatprep.mubr.f32.mxu1 %v783_v6  ;;  %v786_v15 = vmul.f32 %v1195_v7, %v761_v8 }
 0x177   : > { %v680_v9 = vpop.f32.mrf.mxu0 }
 0x178   : > { %v784_v10 = vmul.f32 %v751_v2, %v680_v9 }
 0x179   : > { %v1198_v12 = vpop.f32.mrf.mxu0 }
 0x17a   : > { %1233 = vmatmul.mubr.f32.vlgmr.msra.gmra.mxu1 %v784_v10  ;;  %v789_v22 = vmul.f32 %v1198_v12, %v776_v20 }
 0x17b   : > { %v693_v14 = vpop.f32.mrf.mxu0  ;;  %1235 = vmatprep.mubr.f32.mxu1 %v785_v11 }
 0x17c   : > { %v787_v16 = vmul.f32 %v766_v13, %v693_v14 }
 0x17d   : > { %v1199_v18 = vpop.f32.mrf.mxu0 }
 0x17e   : > { %1236 = vmatmul.mubr.f32.gmra.mxu1 %v786_v15  ;;  %v790_v24 = vmul.f32 %v1199_v18, %v781_v23 }
 0x17f   : > { %v696_v19 = vpop.f32.mrf.mxu0  ;;  %1238 = vmatprep.mubr.f32.mxu1 %v787_v16 }
 0x180   : > { %v788_v21 = vmul.f32 %v771_v17, %v696_v19 }
 0x182   : > { %1239 = vmatmul.mubr.f32.gmra.mxu1 %v788_v21 }
 0x183   : > { %1241 = vmatprep.mubr.f32.mxu1 %v789_v22 }
 0x186   : > { %1242 = vmatmul.mubr.f32.gmra.mxu1 %v790_v24 }
 0x23a   : > { %v1234_v26 = vpop.f32.mrf.mxu1 }
 0x23b   : > { %v886_v27 = vadd.f32 %v1234_v26, %v1098_v25 }
 0x23c   : > { %v880_v28 = vpop.f32.mrf.mxu1 }
 0x23d   : > { %v881_v29 = vadd.f32 %v1098_v25, %v880_v28  ;;  %v920_v31 = vmax.f32 %v886_v27, 0.0 }
 0x23e   : > { %v1237_v30 = vpop.f32.mrf.mxu1 }
 0x23f   : > { %v919_v32 = vmax.f32 %v881_v29, 0.0  ;;  %v896_v34 = vadd.f32 %v1237_v30, %v1098_v25 }
 0x240   : > { %v890_v35 = vpop.f32.mrf.mxu1 }
 0x241   : > { %v1120_v36 = vpack.c.bf16 %v920_v31, %v919_v32  ;;  %v891_v37 = vadd.f32 %v1098_v25, %v890_v35  ;;  %v922_v39 = vmax.f32 %v896_v34, 0.0 }
 0x242   : > { %v1240_v38 = vpop.f32.mrf.mxu1 }
 0x243   : > { %1121 = vst [vmem:[%s342_s15] sm:$0xff] %v1120_v36   ;;  %v921_v40 = vmax.f32 %v891_v37, 0.0  ;;  %v906_v41 = vadd.f32 %v1240_v38, %v1098_v25 }
 0x244   : > { %v900_v42 = vpop.f32.mrf.mxu1 }
 0x245   : > { %v1125_v43 = vpack.c.bf16 %v922_v39, %v921_v40  ;;  %v901_v44 = vadd.f32 %v1098_v25, %v900_v42  ;;  %v924_v46 = vmax.f32 %v906_v41, 0.0 }
 0x246   : > { %v1243_v45 = vpop.f32.mrf.mxu1 }
 0x247   : > { %1137 = vst [vmem:[%s342_s15 + $0x8] sm:$0xff] %v1125_v43   ;;  %v923_v47 = vmax.f32 %v901_v44, 0.0  ;;  %v916_v48 = vadd.f32 %v1243_v45, %v1098_v25 }
 0x248   : > { %v910_v49 = vpop.f32.mrf.mxu1 }
 0x249   : > { %v1130_v50 = vpack.c.bf16 %v924_v46, %v923_v47  ;;  %v911_v51 = vadd.f32 %v1098_v25, %v910_v49  ;;  %v926_v52 = vmax.f32 %v916_v48, 0.0 }
 0x24b   : > { %1138 = vst [vmem:[%s342_s15 + $0x10] sm:$0xff] %v1130_v50   ;;  %v925_v53 = vmax.f32 %v911_v51, 0.0 }
 0x24d   : > { %v1135_v54 = vpack.c.bf16 %v926_v52, %v925_v53 }
 0x24f   : > { %1139 = vst [vmem:[%s342_s15 + $0x18] sm:$0xff] %v1135_v54  }
 0x250 PF: > { %s16_s23 = sadd.s32 1, %s1295_s23   ;;  %s1561_s21 = smov %s1291_s22 }
 0x251   : > { %p13_p6 = scmp.ge.s32.totalorder %s16_s23, 4   ;;  %s1562_s22 = smov %s1564_s24 }
 0x253   :  { %15 = sbr.rel (!%p13_p6) target bundleno = 2 (0x2), region = 91 }

// kernel: gcn_encoder_forward.3
= control target key start
LH: loop header
LB: loop body
LE: loop exit
PB: predicated region body
PF: predicated region fallthrough
CT: control target
= control target key end

     0   :  { %s1256_s21 = smov 0   ;;  %s1258_s22 = smov 0   ;;  %s1478_s0 = inlined_call_operand.vmem [shape: s8[128,128], index: 0, kind: input, shape index: {}]   ;;  %s1479_s1 = inlined_call_operand.vmem [shape: bf16[128,128], index: 1, kind: input, shape index: {}]   ;;  %s1480_s2 = inlined_call_operand.vmem [shape: f32[128,1], index: 2, kind: input, shape index: {}, may-alias: {2,3}]   ;;  %s1481_s3 = inlined_call_operand.vmem [shape: f32[128,1], index: 3, kind: input, shape index: {}, may-alias: {2,3}]   ;;  %s1482_s4 = inlined_call_operand.vmem [shape: f32[128,128], index: 4, kind: input, shape index: {}]   ;;  %s1483_s5 = inlined_call_operand.vmem [shape: f32[1,128], index: 5, kind: input, shape index: {}]   ;;  %s1484_s6 = inlined_call_operand.vmem [shape: f32[128,128], index: 6, kind: output, shape index: {}]  }
   0x1   :  { %s1260_s23 = smov 0  }
   0x2 LB: > { %s28_s24 = sadd.s32 1, %s1212_s22  ;;  %p1043_p0 = scmp.ge.s32.totalorder %s1216_s23, 1  ;;  %s1216_s23 = sphi %s1260_s23, %s16_s23   ;;  %s1212_s22 = sphi %s1258_s22, %s1486_s22   ;;  %s1208_s21 = sphi %s1256_s21, %s1485_s21  }
   0x3   : > { %p30_p1 = scmp.ge.s32.totalorder %s28_s24, 2  ;;  %p263_p2 = scmp.lt.s32.totalorder %s1216_s23, 3 }
   0x5   : > { %s1488_s24 = smov (%p30_p1, %s28_s24), 0  ;;  %p264_p3 = pnand %p1043_p0, %p263_p2 }
   0x6   : > { %s1046_s7 = sshll.u32 (!%p264_p3), %s1208_s21, 3  ;;  %s1044_s19 = sshll.u32 (!%p264_p3), %s1208_s21, 1 }
   0x7   : > { %267 = sbr.rel (%p264_p3) target bundleno = 588 (0x24c), region = 44  ;;  %p333_p4 = scmp.lt.s32.totalorder (!%p264_p3), %s1046_s7, 15 }
   0x8   : > { %p312_p5 = scmp.lt.s32.totalorder (!%p264_p3), %s1044_s19, 3 }
   0xc   : > { %v393_v0 = vld [vmem:[%s1480_s2 + $0x70] sm:$0xff]  ;;  %v394_v1 = vld [vmem:[%s1480_s2 + $0x78] sm:$0xff]  ;;  %v1218_v3 = vmov 0   ;;  %v391_v6 = vld [vmem:[%s1480_s2 + $0x60] sm:$0xff]  ;;  %s1490_s7 = smov (!%p333_p4, %s1046_s7), 15  ;;  %s1492_s19 = smov (!%p312_p5, %s1044_s19), 3  ;;  %v446_v49 = vlaneseq }
   0xd   : > { %v389_v2 = vld [vmem:[%s1480_s2 + $0x50] sm:$0xff]  ;;  %1193 = vset.pattern.permute.xlu1 %v1218_v3  ;;  %1192 = vset.pattern.permute.xlu0 %v1218_v3  ;;  %v402_v4 = vpack.c.bf16 %v394_v1, %v393_v0  ;;  %v390_v5 = vld [vmem:[%s1480_s2 + $0x58] sm:$0xff]  ;;  %v392_v7 = vld [vmem:[%s1480_s2 + $0x68] sm:$0xff]  ;;  %s1047_s15 = sshll.u32 %s1490_s7, 3  ;;  %s1045_s20 = sshll.u32 %s1492_s19, 3 }
   0xe   : > { %v400_v8 = vpack.c.bf16 %v390_v5, %v389_v2  ;;  %v387_v9 = vld [vmem:[%s1480_s2 + $0x40] sm:$0xff]  ;;  %v388_v10 = vld [vmem:[%s1480_s2 + $0x48] sm:$0xff]  ;;  %v401_v11 = vpack.c.bf16 %v392_v7, %v391_v6  ;;  %v385_v13 = vld [vmem:[%s1480_s2 + $0x30] sm:$0xff]  ;;  %s336_s18 = scalar_lea.vmem %s1481_s3, %s1047_s15  ;;  %s1337_s27 = scalar_lea.vmem %s1478_s0, %s1045_s20  ;;  %v1219_v47 = vmov 839922192   ;;  %v447_v53 = vshrl.u32 %v446_v49, 7 }
   0xf   : > { %433 = vperm.xlu0 %1192, %v402_v4   ;;  %v399_v12 = vpack.c.bf16 %v388_v10, %v387_v9  ;;  %v386_v14 = vld [vmem:[%s1480_s2 + $0x38] sm:$0xff]  ;;  %v383_v15 = vld [vmem:[%s1480_s2 + $0x20] sm:$0xff]  ;;  %v384_v16 = vld [vmem:[%s1480_s2 + $0x28] sm:$0xff]  ;;  %v444_v48 = vunpack.c.l.s4 %v1219_v47  ;;  %v1220_v50 = vmov 1985246804  }
  0x10   : > { %425 = vperm.xlu1 %1193, %v400_v8   ;;  %v398_v17 = vpack.c.bf16 %v386_v14, %v385_v13  ;;  %v397_v18 = vpack.c.bf16 %v384_v16, %v383_v15  ;;  %v381_v19 = vld [vmem:[%s1480_s2 + $0x10] sm:$0xff]  ;;  %v382_v20 = vld [vmem:[%s1480_s2 + $0x18] sm:$0xff]  ;;  %v379_v21 = vld [vmem:[%s1480_s2] sm:$0xff]  ;;  %v451_v51 = vunpack.c.l.s4 %v1220_v50 }
  0x11   : > { %v380_v22 = vld [vmem:[%s1480_s2 + $0x8] sm:$0xff]  ;;  %v396_v23 = vpack.c.bf16 %v382_v20, %v381_v19  ;;  %v735_v25 = vld [vmem:[%s336_s18] sm:$0xff]  ;;  %v737_v27 = vld [vmem:[%s336_s18 + $0x10] sm:$0xff]  ;;  %v445_v52 = vunpack.c.0.s8 %v444_v48 }
  0x12   : > { %v395_v24 = vpack.c.bf16 %v380_v22, %v379_v21  ;;  %v736_v26 = vld [vmem:[%s336_s18 + $0x8] sm:$0xff]  ;;  %v738_v28 = vld [vmem:[%s336_s18 + $0x18] sm:$0xff]  ;;  %v739_v29 = vld [vmem:[%s336_s18 + $0x20] sm:$0xff]  ;;  %v452_v54 = vunpack.c.0.s8 %v451_v51 }
  0x13   : > { %429 = vperm.xlu0 %1192, %v401_v11   ;;  %v740_v30 = vld [vmem:[%s336_s18 + $0x28] sm:$0xff]  ;;  %v741_v31 = vld [vmem:[%s336_s18 + $0x30] sm:$0xff]  ;;  %v742_v32 = vld [vmem:[%s336_s18 + $0x38] sm:$0xff]  ;;  %v1379_v55 = vsub.s32 %v445_v52, %v447_v53  ;;  %s342_s18 = scalar_lea.vmem %s1484_s6, %s1047_s15 }
  0x14   : > { %421 = vperm.xlu1 %1193, %v399_v12   ;;  %v1340_v33 = vld [vmem:[%s1337_s27] sm:$0xff]  ;;  %v806_v35 = vld [vmem:[%s1482_s4 + $0x78] sm:$0xff]  ;;  %v805_v36 = vld [vmem:[%s1482_s4 + $0x70] sm:$0xff]  ;;  %v1381_v56 = vsub.s32 %v452_v54, %v447_v53 }
  0x15   : > { %v359_v34 = vunpack.c.l.s8.bf16 %v1340_v33  ;;  %1121 = vmatprep.subr.mxu1 %v806_v35  ;;  %v804_v37 = vld [vmem:[%s1482_s4 + $0x68] sm:$0xff]  ;;  %v803_v38 = vld [vmem:[%s1482_s4 + $0x60] sm:$0xff]  ;;  %v802_v39 = vld [vmem:[%s1482_s4 + $0x58] sm:$0xff] }
  0x16   : > { %1122 = vmatpush3.msra.mxu1 %v806_v35  ;;  %v801_v40 = vld [vmem:[%s1482_s4 + $0x50] sm:$0xff]  ;;  %v800_v41 = vld [vmem:[%s1482_s4 + $0x48] sm:$0xff]  ;;  %v799_v42 = vld [vmem:[%s1482_s4 + $0x40] sm:$0xff] }
  0x17   : > { %417 = vperm.xlu0 %1192, %v398_v17   ;;  %1113 = vmatprep.mubr.bf16.mxu0 %v359_v34  ;;  %v798_v43 = vld [vmem:[%s1482_s4 + $0x38] sm:$0xff]  ;;  %v797_v44 = vld [vmem:[%s1482_s4 + $0x30] sm:$0xff]  ;;  %v796_v45 = vld [vmem:[%s1482_s4 + $0x28] sm:$0xff] }
  0x18   : > { %413 = vperm.xlu1 %1193, %v397_v18   ;;  %1123 = vmatprep.subr.mxu1 %v805_v36  ;;  %v795_v46 = vld [vmem:[%s1482_s4 + $0x20] sm:$0xff]  ;;  %v377_v58 = vld [vmem:[%s1479_s1 + $0x38] sm:$0xf]  ;;  %v378_v59 = vld [vmem:[%s1479_s1 + $0x3c] sm:$0xf] }
  0x19   : > { %1124 = vmatpush3.msra.mxu1 %v805_v36  ;;  %v373_v63 = vld [vmem:[%s1479_s1 + $0x28] sm:$0xf]  ;;  %v374_v0 = vld [vmem:[%s1479_s1 + $0x2c] sm:$0xf]  ;;  %v375_v7 = vld [vmem:[%s1479_s1 + $0x30] sm:$0xf] }
  0x1a   : > { %1125 = vmatprep.subr.mxu1 %v804_v37  ;;  %v376_v8 = vld [vmem:[%s1479_s1 + $0x34] sm:$0xf]  ;;  %v371_v18 = vld [vmem:[%s1479_s1 + $0x20] sm:$0xf]  ;;  %v372_v19 = vld [vmem:[%s1479_s1 + $0x24] sm:$0xf] }
  0x1b   : > { %409 = vperm.xlu0 %1192, %v396_v23   ;;  %1126 = vmatpush3.msra.mxu1 %v804_v37  ;;  %v367_v34 = vld [vmem:[%s1479_s1 + $0x10] sm:$0xf]  ;;  %v368_v37 = vld [vmem:[%s1479_s1 + $0x14] sm:$0xf]  ;;  %v363_v52 = vld [vmem:[%s1479_s1] sm:$0xf] }
  0x1c   : > { %405 = vperm.xlu1 %1193, %v395_v24   ;;  %1127 = vmatprep.subr.mxu1 %v803_v38  ;;  %v364_v53 = vld [vmem:[%s1479_s1 + $0x4] sm:$0xf] }
  0x1d   : > { %1128 = vmatpush3.msra.mxu1 %v803_v38 }
  0x1e   : > { %1129 = vmatprep.subr.mxu1 %v802_v39 }
  0x1f   : > { %745 = vperm.xlu0 %1192, %v735_v25   ;;  %1130 = vmatpush3.msra.mxu1 %v802_v39 }
  0x20   : > { %750 = vperm.xlu1 %1193, %v736_v26   ;;  %1131 = vmatprep.subr.mxu1 %v801_v40 }
  0x21   : > { %1132 = vmatpush3.msra.mxu1 %v801_v40 }
  0x22   : > { %1133 = vmatprep.subr.mxu1 %v800_v41 }
  0x23   : > { %755 = vperm.xlu0 %1192, %v737_v27   ;;  %1134 = vmatpush3.msra.mxu1 %v800_v41 }
  0x24   : > { %760 = vperm.xlu1 %1193, %v738_v28   ;;  %1135 = vmatprep.subr.mxu1 %v799_v42  ;;  %v369_v28 = vld [vmem:[%s1479_s1 + $0x18] sm:$0xf] }
  0x25   : > { %1136 = vmatpush3.msra.mxu1 %v799_v42 }
  0x26   : > { %1137 = vmatprep.subr.mxu1 %v798_v43 }
  0x27   : > { %765 = vperm.xlu0 %1192, %v739_v29   ;;  %1138 = vmatpush3.msra.mxu1 %v798_v43  ;;  %v370_v29 = vld [vmem:[%s1479_s1 + $0x1c] sm:$0xf] }
  0x28   : > { %770 = vperm.xlu1 %1193, %v740_v30   ;;  %1139 = vmatprep.subr.mxu1 %v797_v44 }
  0x29   : > { %1140 = vmatpush3.msra.mxu1 %v797_v44 }
  0x2a   : > { %1141 = vmatprep.subr.mxu1 %v796_v45 }
  0x2b   : > { %775 = vperm.xlu0 %1192, %v741_v31   ;;  %1142 = vmatpush3.msra.mxu1 %v796_v45  ;;  %v365_v45 = vld [vmem:[%s1479_s1 + $0x8] sm:$0xf] }
  0x2c   : > { %780 = vperm.xlu1 %1193, %v742_v32   ;;  %1143 = vmatprep.subr.mxu1 %v795_v46 }
  0x2d   : > { %1144 = vmatpush3.msra.mxu1 %v795_v46  ;;  %v366_v46 = vld [vmem:[%s1479_s1 + $0xc] sm:$0xf] }
  0x8a   : > { %v434_v57 = vpop.permute.xlu0 %433 }
  0x8b   : > { %v547_v60 = vrot.slane %v434_v57, %v1379_v55  ;;  %v554_v61 = vrot.slane %v434_v57, %v1381_v56  ;;  %v426_v62 = vpop.permute.xlu1 %425 }
  0x8c   : > { %v519_v1 = vrot.slane %v426_v62, %v1379_v55  ;;  %v526_v2 = vrot.slane %v426_v62, %v1381_v56  ;;  %v794_v62 = vld [vmem:[%s1482_s4 + $0x18] sm:$0xff] }
  0x8d   : > { %v585_v3 = vmul.bf16 %v547_v60, %v377_v58  ;;  %v586_v4 = vmul.bf16 %v554_v61, %v378_v59  ;;  %v360_v59 = vunpack.c.h.s8.bf16 %v1340_v33  ;;  %1145 = vmatprep.subr.mxu1 %v794_v62  ;;  %v792_v33 = vld [vmem:[%s1482_s4 + $0x8] sm:$0xff] }
  0x8e   : > { %v581_v5 = vmul.bf16 %v519_v1, %v373_v63  ;;  %v430_v6 = vpop.permute.xlu0 %429  ;;  %v582_v9 = vmul.bf16 %v526_v2, %v374_v0  ;;  %v793_v63 = vld [vmem:[%s1482_s4 + $0x10] sm:$0xff]  ;;  %1146 = vmatpush3.msra.mxu1 %v794_v62  ;;  %v791_v0 = vld [vmem:[%s1482_s4] sm:$0xff] }
  0x8f   : > { %v533_v10 = vrot.slane %v430_v6, %v1379_v55  ;;  %v540_v11 = vrot.slane %v430_v6, %v1381_v56  ;;  %v422_v12 = vpop.permute.xlu1 %421  ;;  %v1057_v13 = vcombine.low %v585_v3, %v586_v4  ;;  %1147 = vmatprep.subr.mxu1 %v793_v63 }
  0x90   : > { %v505_v16 = vrot.slane %v422_v12, %v1379_v55  ;;  %v512_v17 = vrot.slane %v422_v12, %v1381_v56  ;;  %v1055_v22 = vcombine.low %v581_v5, %v582_v9  ;;  %1148 = vmatpush3.msra.mxu1 %v793_v63 }
  0x91   : > { %v583_v14 = vmul.bf16 %v533_v10, %v375_v7  ;;  %v584_v15 = vmul.bf16 %v540_v11, %v376_v8  ;;  %1097 = vmatprep.subr.bf16.mxu0 %v1057_v13  ;;  %1149 = vmatprep.subr.mxu1 %v792_v33 }
  0x92   : > { %v418_v20 = vpop.permute.xlu0 %417  ;;  %1098 = vmatpush3.bf16.msra.mxu0 %v1057_v13  ;;  %v579_v23 = vmul.bf16 %v505_v16, %v371_v18  ;;  %v580_v24 = vmul.bf16 %v512_v17, %v372_v19  ;;  %1150 = vmatpush3.msra.mxu1 %v792_v33 }
  0x93   : > { %v1056_v21 = vcombine.low %v583_v14, %v584_v15  ;;  %v491_v25 = vrot.slane %v418_v20, %v1379_v55  ;;  %v498_v26 = vrot.slane %v418_v20, %v1381_v56  ;;  %v414_v27 = vpop.permute.xlu1 %413  ;;  %1151 = vmatprep.subr.mxu1 %v791_v0 }
  0x94   : > { %v477_v30 = vrot.slane %v414_v27, %v1379_v55  ;;  %v484_v35 = vrot.slane %v414_v27, %v1381_v56  ;;  %v1054_v36 = vcombine.low %v579_v23, %v580_v24  ;;  %1152 = vmatpush3.msra.mxu1 %v791_v0 }
  0x95   : > { %1099 = vmatprep.subr.bf16.mxu0 %v1056_v21  ;;  %v577_v31 = vmul.bf16 %v491_v25, %v369_v28  ;;  %v578_v32 = vmul.bf16 %v498_v26, %v370_v29  ;;  %v1058_v25 = vld [vmem:[%s1483_s5] ss:$0 sm:$0xff] }
  0x96   : > { %1100 = vmatpush3.bf16.msra.mxu0 %v1056_v21  ;;  %v410_v38 = vpop.permute.xlu0 %409  ;;  %v575_v39 = vmul.bf16 %v477_v30, %v367_v34  ;;  %v576_v40 = vmul.bf16 %v484_v35, %v368_v37 }
  0x97   : > { %1101 = vmatprep.subr.bf16.mxu0 %v1055_v22  ;;  %v463_v41 = vrot.slane %v410_v38, %v1379_v55  ;;  %v470_v42 = vrot.slane %v410_v38, %v1381_v56  ;;  %v406_v43 = vpop.permute.xlu1 %405  ;;  %v1053_v44 = vcombine.low %v577_v31, %v578_v32 }
  0x98   : > { %v449_v47 = vrot.slane %v406_v43, %v1379_v55  ;;  %v456_v50 = vrot.slane %v406_v43, %v1381_v56  ;;  %v1052_v51 = vcombine.low %v575_v39, %v576_v40  ;;  %v358_v56 = vld [vmem:[%s1337_s27 + $0x8] sm:$0xff] }
  0x99   : > { %v573_v48 = vmul.bf16 %v463_v41, %v365_v45  ;;  %v574_v49 = vmul.bf16 %v470_v42, %v366_v46  ;;  %v361_v60 = vunpack.c.l.s8.bf16 %v358_v56  ;;  %v362_v61 = vunpack.c.h.s8.bf16 %v358_v56 }
  0x9a   : > { %1102 = vmatpush3.bf16.msra.mxu0 %v1055_v22  ;;  %v571_v54 = vmul.bf16 %v449_v47, %v363_v52  ;;  %v572_v57 = vmul.bf16 %v456_v50, %v364_v53  ;;  %v746_v1 = vpop.permute.xlu0 %745 }
  0x9b   : > { %1103 = vmatprep.subr.bf16.mxu0 %v1054_v36  ;;  %v1051_v58 = vcombine.low %v573_v48, %v574_v49  ;;  %v751_v2 = vpop.permute.xlu1 %750 }
  0x9c   : > { %v1050_v55 = vcombine.low %v571_v54, %v572_v57 }
  0x9e   : > { %1104 = vmatpush3.bf16.msra.mxu0 %v1054_v36  ;;  %v756_v5 = vpop.permute.xlu0 %755 }
  0x9f   : > { %1105 = vmatprep.subr.bf16.mxu0 %v1053_v44  ;;  %v761_v8 = vpop.permute.xlu1 %760 }
  0xa2   : > { %1106 = vmatpush3.bf16.msra.mxu0 %v1053_v44  ;;  %v766_v13 = vpop.permute.xlu0 %765 }
  0xa3   : > { %1107 = vmatprep.subr.bf16.mxu0 %v1052_v51  ;;  %v771_v17 = vpop.permute.xlu1 %770 }
  0xa6   : > { %1108 = vmatpush3.bf16.msra.mxu0 %v1052_v51  ;;  %v776_v20 = vpop.permute.xlu0 %775 }
  0xa7   : > { %1109 = vmatprep.subr.bf16.mxu0 %v1051_v58  ;;  %v781_v23 = vpop.permute.xlu1 %780 }
  0xaa   : > { %1110 = vmatpush3.bf16.msra.mxu0 %v1051_v58 }
  0xab   : > { %1111 = vmatprep.subr.bf16.mxu0 %v1050_v55 }
  0xae   : > { %1112 = vmatpush3.bf16.msra.mxu0 %v1050_v55 }
  0xb1   : > { %1114 = vmatmul.mubr.bf16.vlgmr.msra.gmra.mxu0 %v360_v59 }
  0xb2   : > { %1117 = vmatprep.mubr.bf16.mxu0 %v361_v60 }
  0xb9   : > { %1118 = vmatmul.mubr.bf16.gmra.mxu0 %v362_v61 }
 0x171   : > { %v1115_v3 = vpop.f32.mrf.mxu0 }
 0x172   : > { %v785_v11 = vmul.f32 %v1115_v3, %v756_v5 }
 0x173   : > { %v677_v4 = vpop.f32.mrf.mxu0 }
 0x174   : > { %v783_v6 = vmul.f32 %v746_v1, %v677_v4 }
 0x175   : > { %v1116_v7 = vpop.f32.mrf.mxu0 }
 0x176   : > { %1153 = vmatprep.mubr.f32.mxu1 %v783_v6  ;;  %v786_v15 = vmul.f32 %v1116_v7, %v761_v8 }
 0x177   : > { %v680_v9 = vpop.f32.mrf.mxu0 }
 0x178   : > { %v784_v10 = vmul.f32 %v751_v2, %v680_v9 }
 0x179   : > { %v1119_v12 = vpop.f32.mrf.mxu0 }
 0x17a   : > { %1154 = vmatmul.mubr.f32.vlgmr.msra.gmra.mxu1 %v784_v10  ;;  %v789_v22 = vmul.f32 %v1119_v12, %v776_v20 }
 0x17b   : > { %v693_v14 = vpop.f32.mrf.mxu0  ;;  %1156 = vmatprep.mubr.f32.mxu1 %v785_v11 }
 0x17c   : > { %v787_v16 = vmul.f32 %v766_v13, %v693_v14 }
 0x17d   : > { %v1120_v18 = vpop.f32.mrf.mxu0 }
 0x17e   : > { %1157 = vmatmul.mubr.f32.gmra.mxu1 %v786_v15  ;;  %v790_v24 = vmul.f32 %v1120_v18, %v781_v23 }
 0x17f   : > { %v696_v19 = vpop.f32.mrf.mxu0  ;;  %1159 = vmatprep.mubr.f32.mxu1 %v787_v16 }
 0x180   : > { %v788_v21 = vmul.f32 %v771_v17, %v696_v19 }
 0x182   : > { %1160 = vmatmul.mubr.f32.gmra.mxu1 %v788_v21 }
 0x183   : > { %1162 = vmatprep.mubr.f32.mxu1 %v789_v22 }
 0x186   : > { %1163 = vmatmul.mubr.f32.gmra.mxu1 %v790_v24 }
 0x23a   : > { %v1155_v26 = vpop.f32.mrf.mxu1 }
 0x23b   : > { %v886_v27 = vadd.f32 %v1155_v26, %v1058_v25 }
 0x23c   : > { %v880_v28 = vpop.f32.mrf.mxu1 }
 0x23d   : > { %920 = vst [vmem:[%s342_s18 + $0x8] sm:$0xff] %v886_v27  ;;  %v881_v29 = vadd.f32 %v1058_v25, %v880_v28 }
 0x23e   : > { %v1158_v30 = vpop.f32.mrf.mxu1 }
 0x23f   : > { %919 = vst [vmem:[%s342_s18] sm:$0xff] %v881_v29  ;;  %v896_v31 = vadd.f32 %v1158_v30, %v1058_v25 }
 0x240   : > { %v890_v32 = vpop.f32.mrf.mxu1 }
 0x241   : > { %922 = vst [vmem:[%s342_s18 + $0x18] sm:$0xff] %v896_v31  ;;  %v891_v34 = vadd.f32 %v1058_v25, %v890_v32 }
 0x242   : > { %v1161_v35 = vpop.f32.mrf.mxu1 }
 0x243   : > { %921 = vst [vmem:[%s342_s18 + $0x10] sm:$0xff] %v891_v34  ;;  %v906_v36 = vadd.f32 %v1161_v35, %v1058_v25 }
 0x244   : > { %v900_v37 = vpop.f32.mrf.mxu1 }
 0x245   : > { %924 = vst [vmem:[%s342_s18 + $0x28] sm:$0xff] %v906_v36  ;;  %v901_v38 = vadd.f32 %v1058_v25, %v900_v37 }
 0x246   : > { %v1164_v39 = vpop.f32.mrf.mxu1 }
 0x247   : > { %923 = vst [vmem:[%s342_s18 + $0x20] sm:$0xff] %v901_v38  ;;  %v916_v40 = vadd.f32 %v1164_v39, %v1058_v25 }
 0x248   : > { %v910_v41 = vpop.f32.mrf.mxu1 }
 0x249   : > { %926 = vst [vmem:[%s342_s18 + $0x38] sm:$0xff] %v916_v40  ;;  %v911_v42 = vadd.f32 %v1058_v25, %v910_v41 }
 0x24b   : > { %925 = vst [vmem:[%s342_s18 + $0x30] sm:$0xff] %v911_v42 }
 0x24c PF: > { %s16_s23 = sadd.s32 1, %s1216_s23   ;;  %s1485_s21 = smov %s1212_s22 }
 0x24d   : > { %p13_p6 = scmp.ge.s32.totalorder %s16_s23, 4   ;;  %s1486_s22 = smov %s1488_s24 }
 0x24f   :  { %15 = sbr.rel (!%p13_p6) target bundleno = 2 (0x2), region = 91 }

</bundles_post_ra>
